<compile_context>
chip_gen: v7x
topology: tpu7x:2x2x1
jax: 0.10.0
libtpu: 0.0.40
codegen_flags: <defaults>
</compile_context>

<pallas_src>
import functools

import jax
import jax.numpy as jnp
from jax.experimental import pallas as pl
from jax.experimental.pallas import tpu as pltpu


def _cdc_kernel(x_ref, halo_ref, wmask_ref, w_ref, b_ref, o_ref,
                buf_ref, col_ref, *, K, pad, th, W, Cin):
    """One (batch, row-tile) step of the folded CDC conv.

    x_ref    : (Cin, th*W)        row-tile body, NCHW pixels flattened (lane dense)
    halo_ref : (Cin, 2*pad*W)     pad rows above + below the tile (zeros at edges)
    wmask_ref: (K, th*W)          per-kw width-padding masks (1 inside row, 0 outside)
    w_ref    : (Cout, K*K*Cin)    folded weights, column = (kh*K + kw)*Cin + cin
    b_ref    : (Cout, 1)          folded bias ((1-theta)*b), f32
    o_ref    : (Cout, th*W)       output tile (NCHW pixels flattened, lane dense)
    buf_ref  : (Cin, (th+2p)*W + 2p)  scratch: flat window buffer
    col_ref  : (K*K*Cin, th*W)    scratch: contiguous im2col tile
    """
    pw = pad * W
    tw = th * W

    # --- assemble the flat window buffer: image rows [t*th - pad, t*th+th+pad),
    #     flattened, with `pad` zero lanes at each end so every tap slice below
    #     is in-bounds.  Width zero-padding is handled by the per-tap masks.
    zend = jnp.zeros((Cin, pad), buf_ref.dtype)
    buf_ref[:, 0:pad] = zend
    buf_ref[:, pad:pad + pw] = halo_ref[:, 0:pw]                      # rows above
    buf_ref[:, pad + pw:pad + pw + tw] = x_ref[...]                   # body rows
    buf_ref[:, pad + pw + tw:pad + 2 * pw + tw] = halo_ref[:, pw:]    # rows below
    buf_ref[:, pad + 2 * pw + tw:] = zend

    # --- im2col into a contiguous scratch: row = (kh*K + kw)*Cin + c, col = pixel
    for kh in range(K):
        for kw in range(K):
            tap = kh * K + kw
            shift = kh * W + kw
            v = buf_ref[:, shift:shift + tw]
            if kw != pad:   # zero columns that wrapped across image rows
                v = v * wmask_ref[kw:kw + 1, :]
            col_ref[tap * Cin:(tap + 1) * Cin, :] = v

    # --- one MXU matmul for all K*K taps (f32 accumulate) + bias -------------
    acc = jnp.dot(w_ref[...], col_ref[...], preferred_element_type=jnp.float32)
    acc = acc + b_ref[...].astype(jnp.float32)
    o_ref[...] = acc.astype(o_ref.dtype)


def _roundup(v, m):
    return -(-v // m) * m


def _padded_bytes(shape, itemsize):
    """VMEM footprint of an array, rounded up to (sublane, 128-lane) tiles."""
    s = list(shape)
    s[-1] = _roundup(s[-1], 128)
    if len(s) >= 2:
        s[-2] = _roundup(s[-2], 8 * max(1, 4 // itemsize))
    n = 1
    for d in s:
        n *= d
    return n * itemsize


def _tile_vmem_bytes(th, W, Cin, Cout, K, pad, itemsize):
    """Working-set estimate for one grid step (double-buffered I/O + scratch)."""
    kk = K * K
    tw = th * W
    b = 0
    b += 2 * _padded_bytes((Cin, tw), itemsize)                         # x tile
    b += 2 * _padded_bytes((Cin, 2 * pad * W), itemsize)                # halo rows
    b += 2 * _padded_bytes((K, tw), itemsize)                           # width masks
    b += 2 * _padded_bytes((Cout, kk * Cin), itemsize)                  # weights
    b += 2 * _padded_bytes((Cout, 1), 4)                                # bias (f32)
    b += 2 * _padded_bytes((Cout, tw), itemsize)                        # output tile
    b += _padded_bytes((Cin, (th + 2 * pad) * W + 2 * pad), itemsize)   # buf scratch
    b += _padded_bytes((kk * Cin, tw), itemsize)                        # im2col
    b += _padded_bytes((Cout, tw), 4)                                   # f32 result
    return b


def _legal_row_tile(th, H, W):
    return H % th == 0 and (th == H or (th * W) % 128 == 0)


def _pick_row_tile(N, H, W, Cin, Cout, K, pad, itemsize, budget, min_tiles=4):
    cands = [d for d in range(1, H + 1) if _legal_row_tile(d, H, W)]
    cands.sort(reverse=True)                         # always contains H
    fitting = [d for d in cands
               if _tile_vmem_bytes(d, W, Cin, Cout, K, pad, itemsize) <= budget]
    if not fitting:
        fitting = [cands[-1]]                        # smallest legal tile
    th = fitting[0]                                  # biggest tile that fits VMEM...
    for d in fitting:                                # ...with enough grid steps
        if N * (H // d) >= min_tiles:
            th = d
            break
    return th


def cdc_conv(x, weight, bias, *, theta=0.7, row_tile=None, compute_dtype=None):
    """Forward pass of CDC_conv.

    x: (N, Cin, H, W) NCHW, weight: (Cout, Cin, K, K), bias: (Cout,).
    compute_dtype: optionally jnp.bfloat16 on v6e/v7x to halve HBM/VMEM traffic
    (MXU accumulation stays f32).  Default: x.dtype.
    """
    N, Cin, H, W = x.shape
    Cout, cin_w, K, k2 = weight.shape
    if cin_w != Cin or k2 != K:
        raise ValueError("weight shape does not match input channels / square kernel")
    if K % 2 == 0 or K < 3:
        # TODO(synk): even / 1x1 kernels not supported by this kernel.
        raise NotImplementedError("only odd kernel_size >= 3 with module defaults")
    pad = K // 2

    # ---- fold the central-difference term into a single conv ----------------
    if theta < 1e-6:     # matches the module's `theta - 0.0 < 1e-06` early exit
        w_eff, b_eff = weight, bias
    else:
        w_eff = weight.at[:, :, pad, pad].add(-theta * weight.sum(axis=(2, 3)))
        b_eff = (1.0 - theta) * bias

    cdt = jnp.dtype(compute_dtype) if compute_dtype is not None else jnp.dtype(x.dtype)
    itemsize = cdt.itemsize

    # ---- generation-aware VMEM budget ----------------------------------------
    try:
        vmem_cap = int(pltpu.get_tpu_info().vmem_capacity_bytes)
    except Exception:
        vmem_cap = 64 << 20                       # conservative fallback (v7x size)
    budget = int(vmem_cap * 0.45)                 # ~29 MiB on v7x, ~58 MiB on v5e/v6e

    if row_tile is not None:
        if not _legal_row_tile(row_tile, H, W):
            raise ValueError(
                f"row_tile={row_tile} must divide H={H} and row_tile*W must be a "
                f"multiple of 128 (unless row_tile == H)")
        th = row_tile
    else:
        th = _pick_row_tile(N, H, W, Cin, Cout, K, pad, itemsize, budget)
    n_ht = H // th

    # ---- host-side prep: NO transposes, NO full-tensor pad, NO window dup ----
    x_c = x.astype(cdt)
    x_flat = x_c.reshape(N, Cin, H * W)           # metadata-only reshape, stays NCHW

    # only the 2*pad halo rows per tile are gathered (tiny vs. the full input)
    zrow = jnp.zeros((N, Cin, pad, W), cdt)
    halo_tiles = []
    for t in range(n_ht):
        r0 = t * th
        top = zrow if t == 0 else x_c[:, :, r0 - pad:r0, :]
        bot = zrow if t == n_ht - 1 else x_c[:, :, r0 + th:r0 + th + pad, :]
        halo_tiles.append(jnp.concatenate([top, bot], axis=2))
    halo = jnp.stack(halo_tiles, axis=1).reshape(N, n_ht, Cin, 2 * pad * W)

    # width-padding masks per kw tap (1.0 where the tap stays inside the row)
    col_in_row = jnp.arange(th * W, dtype=jnp.int32) % W
    wmask = jnp.stack(
        [((col_in_row + (kw - pad) >= 0) & (col_in_row + (kw - pad) < W)).astype(cdt)
         for kw in range(K)], axis=0)             # (K, th*W)

    # folded weights: column index = (kh*K + kw)*Cin + cin (matches im2col rows)
    wf = jnp.transpose(w_eff, (0, 2, 3, 1)).reshape(Cout, K * K * Cin).astype(cdt)
    b2 = b_eff.reshape(Cout, 1).astype(jnp.float32)

    tile_bytes = _tile_vmem_bytes(th, W, Cin, Cout, K, pad, itemsize)
    vmem_limit = int(min(max(tile_bytes + (2 << 20), 32 << 20), vmem_cap - (8 << 20)))

    kernel = functools.partial(_cdc_kernel, K=K, pad=pad, th=th, W=W, Cin=Cin)

    out_flat = pl.pallas_call(
        kernel,
        out_shape=jax.ShapeDtypeStruct((N, Cout, H * W), x.dtype),
        grid_spec=pltpu.PrefetchScalarGridSpec(
            num_scalar_prefetch=0,
            grid=(N, n_ht),
            in_specs=[
                pl.BlockSpec((None, Cin, th * W), lambda n, t: (n, 0, t)),
                pl.BlockSpec((None, None, Cin, 2 * pad * W),
                             lambda n, t: (n, t, 0, 0)),
                pl.BlockSpec((K, th * W), lambda n, t: (0, 0)),
                pl.BlockSpec((Cout, K * K * Cin), lambda n, t: (0, 0)),
                pl.BlockSpec((Cout, 1), lambda n, t: (0, 0)),
            ],
            out_specs=pl.BlockSpec((None, Cout, th * W), lambda n, t: (n, 0, t)),
            scratch_shapes=[
                pltpu.VMEM((Cin, (th + 2 * pad) * W + 2 * pad), cdt),
                pltpu.VMEM((K * K * Cin, th * W), cdt),
            ],
        ),
        compiler_params=pltpu.CompilerParams(
            dimension_semantics=("parallel", "parallel"),
            vmem_limit_bytes=vmem_limit),
    )(x_flat, halo, wmask, wf, b2)

    return out_flat.reshape(N, Cout, H, W)        # metadata-only reshape, still NCHW


def _reference(x, weight, bias, theta):
    """Pure-JAX mirror of the PyTorch forward (two separate convs)."""
    dn = jax.lax.conv_dimension_numbers(x.shape, weight.shape,
                                        ("NCHW", "OIHW", "NCHW"))
    p = weight.shape[-1] // 2
    norm = jax.lax.conv_general_dilated(x, weight, (1, 1), ((p, p), (p, p)),
                                        dimension_numbers=dn)
    norm = norm + bias[None, :, None, None]
    if theta < 1e-6:
        return norm
    kd = weight.sum(axis=(2, 3))[:, :, None, None]
    diff = jax.lax.conv_general_dilated(x, kd, (1, 1), ((0, 0), (0, 0)),
                                        dimension_numbers=dn)
    diff = diff + bias[None, :, None, None]
    return norm - theta * diff


if __name__ == "__main__":
    key = jax.random.PRNGKey(0)
    k1, k2, k3 = jax.random.split(key, 3)

    N, Cin, H, W = 2, 4, 16, 16
    Cout, K = 8, 3
    theta = 0.7

    x = jax.random.normal(k1, (N, Cin, H, W), dtype=jnp.float32)
    fan_in = Cin * K * K
    bound = 1.0 / (fan_in ** 0.5)
    weight = jax.random.uniform(k2, (Cout, Cin, K, K), jnp.float32, -bound, bound)
    bias = jax.random.uniform(k3, (Cout,), jnp.float32, -bound, bound)

    # main path (theta = 0.7, auto row tile)
    out = jax.block_until_ready(cdc_conv(x, weight, bias, theta=theta))
    ref = _reference(x, weight, bias, theta)
    assert out.shape == (N, Cout, H, W)
    assert jnp.allclose(out, ref, atol=1e-4, rtol=1e-4)

    # theta ~ 0 branch (plain conv, no central difference)
    out0 = jax.block_until_ready(cdc_conv(x, weight, bias, theta=0.0))
    ref0 = _reference(x, weight, bias, 0.0)
    assert jnp.allclose(out0, ref0, atol=1e-4, rtol=1e-4)

    # single-row-tile path (whole image per grid step, halo all zeros)
    out1 = jax.block_until_ready(cdc_conv(x, weight, bias, theta=theta, row_tile=H))
    assert jnp.allclose(out1, ref, atol=1e-4, rtol=1e-4)

    print("KERNEL_OK")
</pallas_src>

<mosaic_0001>
module attributes {stable_mosaic.version = 11 : i64} {
  func.func @_cdc_kernel(%arg0: i32, %arg1: i32, %arg2: memref<1x4x128xf32, #tpu.memory_space<vmem>>, %arg3: memref<1x1x4x32xf32, #tpu.memory_space<vmem>>, %arg4: memref<3x128xf32, #tpu.memory_space<vmem>>, %arg5: memref<8x36xf32, #tpu.memory_space<vmem>>, %arg6: memref<8x1xf32, #tpu.memory_space<vmem>>, %arg7: memref<1x8x128xf32, #tpu.memory_space<vmem>>, %arg8: memref<4x162xf32, #tpu.memory_space<vmem>>, %arg9: memref<36x128xf32, #tpu.memory_space<vmem>>) attributes {dimension_semantics = [#tpu.dimension_semantics<parallel>, #tpu.dimension_semantics<parallel>], iteration_bounds = array<i64: 2, 2>, scalar_prefetch = 0 : i64, scratch_operands = 2 : i64, tpu.core_type = #tpu.core_type<tc>, window_params = [{transform_indices = @transform_0, window_bounds = array<i64: 1, 4, 128>}, {transform_indices = @transform_1, window_bounds = array<i64: 1, 1, 4, 32>}, {pipeline_mode = #tpu.pipeline_mode<synchronous>, transform_indices = @transform_2, window_bounds = array<i64: 3, 128>}, {pipeline_mode = #tpu.pipeline_mode<synchronous>, transform_indices = @transform_3, window_bounds = array<i64: 8, 36>}, {pipeline_mode = #tpu.pipeline_mode<synchronous>, transform_indices = @transform_4, window_bounds = array<i64: 8, 1>}, {transform_indices = @transform_5, window_bounds = array<i64: 1, 8, 128>}]} {
    %cst = arith.constant 0.000000e+00 : f32
    %0 = vector.broadcast %cst : f32 to vector<4x1xf32>
    %c0 = arith.constant 0 : index
    %c0_0 = arith.constant 0 : index
    %1 = vector.load %arg8[%c0, %c0_0] : memref<4x162xf32, #tpu.memory_space<vmem>>, vector<4x1xf32>
    tpu.vector_store %arg8[%c0, %c0_0], %0 {strides = array<i32>} : memref<4x162xf32, #tpu.memory_space<vmem>>, vector<4x1xf32>,
    %c0_1 = arith.constant 0 : index
    %c0_2 = arith.constant 0 : index
    %c0_3 = arith.constant 0 : index
    %c0_4 = arith.constant 0 : index
    %2 = vector.load %arg3[%c0_1, %c0_2, %c0_3, %c0_4] : memref<1x1x4x32xf32, #tpu.memory_space<vmem>>, vector<1x1x4x16xf32>
    %3 = vector.shape_cast %2 : vector<1x1x4x16xf32> to vector<4x16xf32>
    %c0_5 = arith.constant 0 : index
    %c1 = arith.constant 1 : index
    %4 = vector.load %arg8[%c0_5, %c1] : memref<4x162xf32, #tpu.memory_space<vmem>>, vector<4x16xf32>
    tpu.vector_store %arg8[%c0_5, %c1], %3 {strides = array<i32>} : memref<4x162xf32, #tpu.memory_space<vmem>>, vector<4x16xf32>,
    %c0_6 = arith.constant 0 : index
    %c0_7 = arith.constant 0 : index
    %c0_8 = arith.constant 0 : index
    %5 = vector.load %arg2[%c0_6, %c0_7, %c0_8] : memref<1x4x128xf32, #tpu.memory_space<vmem>>, vector<1x4x128xf32>
    %6 = vector.shape_cast %5 : vector<1x4x128xf32> to vector<4x128xf32>
    %c0_9 = arith.constant 0 : index
    %c17 = arith.constant 17 : index
    %7 = vector.load %arg8[%c0_9, %c17] : memref<4x162xf32, #tpu.memory_space<vmem>>, vector<4x128xf32>
    tpu.vector_store %arg8[%c0_9, %c17], %6 {strides = array<i32>} : memref<4x162xf32, #tpu.memory_space<vmem>>, vector<4x128xf32>,
    %c0_10 = arith.constant 0 : index
    %c0_11 = arith.constant 0 : index
    %c0_12 = arith.constant 0 : index
    %c16 = arith.constant 16 : index
    %8 = vector.load %arg3[%c0_10, %c0_11, %c0_12, %c16] : memref<1x1x4x32xf32, #tpu.memory_space<vmem>>, vector<1x1x4x16xf32>
    %9 = vector.shape_cast %8 : vector<1x1x4x16xf32> to vector<4x16xf32>
    %c0_13 = arith.constant 0 : index
    %c145 = arith.constant 145 : index
    %10 = vector.load %arg8[%c0_13, %c145] : memref<4x162xf32, #tpu.memory_space<vmem>>, vector<4x16xf32>
    tpu.vector_store %arg8[%c0_13, %c145], %9 {strides = array<i32>} : memref<4x162xf32, #tpu.memory_space<vmem>>, vector<4x16xf32>,
    %c0_14 = arith.constant 0 : index
    %c161 = arith.constant 161 : index
    %11 = vector.load %arg8[%c0_14, %c161] : memref<4x162xf32, #tpu.memory_space<vmem>>, vector<4x1xf32>
    tpu.vector_store %arg8[%c0_14, %c161], %0 {strides = array<i32>} : memref<4x162xf32, #tpu.memory_space<vmem>>, vector<4x1xf32>,
    %c0_15 = arith.constant 0 : index
    %c0_16 = arith.constant 0 : index
    %12 = vector.load %arg8[%c0_15, %c0_16] : memref<4x162xf32, #tpu.memory_space<vmem>>, vector<4x128xf32>
    %c0_17 = arith.constant 0 : index
    %c0_18 = arith.constant 0 : index
    %13 = vector.load %arg4[%c0_17, %c0_18] : memref<3x128xf32, #tpu.memory_space<vmem>>, vector<1x128xf32>
    %14 = vector.broadcast %13 : vector<1x128xf32> to vector<4x128xf32>
    %15 = arith.mulf %12, %14 : vector<4x128xf32>
    %c0_19 = arith.constant 0 : index
    %c0_20 = arith.constant 0 : index
    %16 = vector.load %arg9[%c0_19, %c0_20] : memref<36x128xf32, #tpu.memory_space<vmem>>, vector<4x128xf32>
    tpu.vector_store %arg9[%c0_19, %c0_20], %15 {strides = array<i32>} : memref<36x128xf32, #tpu.memory_space<vmem>>, vector<4x128xf32>,
    %c0_21 = arith.constant 0 : index
    %c1_22 = arith.constant 1 : index
    %17 = vector.load %arg8[%c0_21, %c1_22] : memref<4x162xf32, #tpu.memory_space<vmem>>, vector<4x128xf32>
    %c4 = arith.constant 4 : index
    %c0_23 = arith.constant 0 : index
    %18 = vector.load %arg9[%c4, %c0_23] : memref<36x128xf32, #tpu.memory_space<vmem>>, vector<4x128xf32>
    tpu.vector_store %arg9[%c4, %c0_23], %17 {strides = array<i32>} : memref<36x128xf32, #tpu.memory_space<vmem>>, vector<4x128xf32>,
    %c0_24 = arith.constant 0 : index
    %c2 = arith.constant 2 : index
    %19 = vector.load %arg8[%c0_24, %c2] : memref<4x162xf32, #tpu.memory_space<vmem>>, vector<4x128xf32>
    %c2_25 = arith.constant 2 : index
    %c0_26 = arith.constant 0 : index
    %20 = vector.load %arg4[%c2_25, %c0_26] : memref<3x128xf32, #tpu.memory_space<vmem>>, vector<1x128xf32>
    %21 = vector.broadcast %20 : vector<1x128xf32> to vector<4x128xf32>
    %22 = arith.mulf %19, %21 : vector<4x128xf32>
    %c8 = arith.constant 8 : index
    %c0_27 = arith.constant 0 : index
    %23 = vector.load %arg9[%c8, %c0_27] : memref<36x128xf32, #tpu.memory_space<vmem>>, vector<4x128xf32>
    tpu.vector_store %arg9[%c8, %c0_27], %22 {strides = array<i32>} : memref<36x128xf32, #tpu.memory_space<vmem>>, vector<4x128xf32>,
    %c0_28 = arith.constant 0 : index
    %c16_29 = arith.constant 16 : index
    %24 = vector.load %arg8[%c0_28, %c16_29] : memref<4x162xf32, #tpu.memory_space<vmem>>, vector<4x128xf32>
    %c0_30 = arith.constant 0 : index
    %c0_31 = arith.constant 0 : index
    %25 = vector.load %arg4[%c0_30, %c0_31] : memref<3x128xf32, #tpu.memory_space<vmem>>, vector<1x128xf32>
    %26 = vector.broadcast %25 : vector<1x128xf32> to vector<4x128xf32>
    %27 = arith.mulf %24, %26 : vector<4x128xf32>
    %c12 = arith.constant 12 : index
    %c0_32 = arith.constant 0 : index
    %28 = vector.load %arg9[%c12, %c0_32] : memref<36x128xf32, #tpu.memory_space<vmem>>, vector<4x128xf32>
    tpu.vector_store %arg9[%c12, %c0_32], %27 {strides = array<i32>} : memref<36x128xf32, #tpu.memory_space<vmem>>, vector<4x128xf32>,
    %c0_33 = arith.constant 0 : index
    %c17_34 = arith.constant 17 : index
    %29 = vector.load %arg8[%c0_33, %c17_34] : memref<4x162xf32, #tpu.memory_space<vmem>>, vector<4x128xf32>
    %c16_35 = arith.constant 16 : index
    %c0_36 = arith.constant 0 : index
    %30 = vector.load %arg9[%c16_35, %c0_36] : memref<36x128xf32, #tpu.memory_space<vmem>>, vector<4x128xf32>
    tpu.vector_store %arg9[%c16_35, %c0_36], %29 {strides = array<i32>} : memref<36x128xf32, #tpu.memory_space<vmem>>, vector<4x128xf32>,
    %c0_37 = arith.constant 0 : index
    %c18 = arith.constant 18 : index
    %31 = vector.load %arg8[%c0_37, %c18] : memref<4x162xf32, #tpu.memory_space<vmem>>, vector<4x128xf32>
    %c2_38 = arith.constant 2 : index
    %c0_39 = arith.constant 0 : index
    %32 = vector.load %arg4[%c2_38, %c0_39] : memref<3x128xf32, #tpu.memory_space<vmem>>, vector<1x128xf32>
    %33 = vector.broadcast %32 : vector<1x128xf32> to vector<4x128xf32>
    %34 = arith.mulf %31, %33 : vector<4x128xf32>
    %c20 = arith.constant 20 : index
    %c0_40 = arith.constant 0 : index
    %35 = vector.load %arg9[%c20, %c0_40] : memref<36x128xf32, #tpu.memory_space<vmem>>, vector<4x128xf32>
    tpu.vector_store %arg9[%c20, %c0_40], %34 {strides = array<i32>} : memref<36x128xf32, #tpu.memory_space<vmem>>, vector<4x128xf32>,
    %c0_41 = arith.constant 0 : index
    %c32 = arith.constant 32 : index
    %36 = vector.load %arg8[%c0_41, %c32] : memref<4x162xf32, #tpu.memory_space<vmem>>, vector<4x128xf32>
    %c0_42 = arith.constant 0 : index
    %c0_43 = arith.constant 0 : index
    %37 = vector.load %arg4[%c0_42, %c0_43] : memref<3x128xf32, #tpu.memory_space<vmem>>, vector<1x128xf32>
    %38 = vector.broadcast %37 : vector<1x128xf32> to vector<4x128xf32>
    %39 = arith.mulf %36, %38 : vector<4x128xf32>
    %c24 = arith.constant 24 : index
    %c0_44 = arith.constant 0 : index
    %40 = vector.load %arg9[%c24, %c0_44] : memref<36x128xf32, #tpu.memory_space<vmem>>, vector<4x128xf32>
    tpu.vector_store %arg9[%c24, %c0_44], %39 {strides = array<i32>} : memref<36x128xf32, #tpu.memory_space<vmem>>, vector<4x128xf32>,
    %c0_45 = arith.constant 0 : index
    %c33 = arith.constant 33 : index
    %41 = vector.load %arg8[%c0_45, %c33] : memref<4x162xf32, #tpu.memory_space<vmem>>, vector<4x128xf32>
    %c28 = arith.constant 28 : index
    %c0_46 = arith.constant 0 : index
    %42 = vector.load %arg9[%c28, %c0_46] : memref<36x128xf32, #tpu.memory_space<vmem>>, vector<4x128xf32>
    tpu.vector_store %arg9[%c28, %c0_46], %41 {strides = array<i32>} : memref<36x128xf32, #tpu.memory_space<vmem>>, vector<4x128xf32>,
    %c0_47 = arith.constant 0 : index
    %c34 = arith.constant 34 : index
    %43 = vector.load %arg8[%c0_47, %c34] : memref<4x162xf32, #tpu.memory_space<vmem>>, vector<4x128xf32>
    %c2_48 = arith.constant 2 : index
    %c0_49 = arith.constant 0 : index
    %44 = vector.load %arg4[%c2_48, %c0_49] : memref<3x128xf32, #tpu.memory_space<vmem>>, vector<1x128xf32>
    %45 = vector.broadcast %44 : vector<1x128xf32> to vector<4x128xf32>
    %46 = arith.mulf %43, %45 : vector<4x128xf32>
    %c32_50 = arith.constant 32 : index
    %c0_51 = arith.constant 0 : index
    %47 = vector.load %arg9[%c32_50, %c0_51] : memref<36x128xf32, #tpu.memory_space<vmem>>, vector<4x128xf32>
    tpu.vector_store %arg9[%c32_50, %c0_51], %46 {strides = array<i32>} : memref<36x128xf32, #tpu.memory_space<vmem>>, vector<4x128xf32>,
    %c0_52 = arith.constant 0 : index
    %c0_53 = arith.constant 0 : index
    %48 = vector.load %arg5[%c0_52, %c0_53] : memref<8x36xf32, #tpu.memory_space<vmem>>, vector<8x36xf32>
    %c0_54 = arith.constant 0 : index
    %c0_55 = arith.constant 0 : index
    %49 = vector.load %arg9[%c0_54, %c0_55] : memref<36x128xf32, #tpu.memory_space<vmem>>, vector<36x128xf32>
    %cst_56 = arith.constant dense<0.000000e+00> : vector<8x128xf32>
    %50 = tpu.matmul %48, %49, %cst_56 {dimension_numbers = #tpu.dot_dimension_numbers<[1], [0], [0], [1], [0, 0, 1, 1], [], []>} : vector<8x36xf32>, vector<36x128xf32>, vector<8x128xf32> -> vector<8x128xf32>
    %c0_57 = arith.constant 0 : index
    %c0_58 = arith.constant 0 : index
    %51 = vector.load %arg6[%c0_57, %c0_58] : memref<8x1xf32, #tpu.memory_space<vmem>>, vector<8x1xf32>
    %52 = vector.broadcast %51 : vector<8x1xf32> to vector<8x128xf32>
    %53 = arith.addf %50, %52 : vector<8x128xf32>
    %c0_59 = arith.constant 0 : index
    %c0_60 = arith.constant 0 : index
    %c0_61 = arith.constant 0 : index
    %54 = vector.load %arg7[%c0_59, %c0_60, %c0_61] : memref<1x8x128xf32, #tpu.memory_space<vmem>>, vector<1x8x128xf32>
    %55 = vector.shape_cast %54 : vector<1x8x128xf32> to vector<8x128xf32>
    %56 = vector.shape_cast %53 : vector<8x128xf32> to vector<1x8x128xf32>
    tpu.vector_store %arg7[%c0_59, %c0_60, %c0_61], %56 {strides = array<i32>} : memref<1x8x128xf32, #tpu.memory_space<vmem>>, vector<1x8x128xf32>,
    return
  }
  func.func @transform_0(%arg0: i32, %arg1: i32) -> (i32, i32, i32) {
    %c0_i32 = arith.constant 0 : i32
    %c0_i32_0 = arith.constant 0 : i32
    return %arg0, %c0_i32, %arg1 : i32, i32, i32
  }
  func.func @transform_1(%arg0: i32, %arg1: i32) -> (i32, i32, i32, i32) {
    %c0_i32 = arith.constant 0 : i32
    %c0_i32_0 = arith.constant 0 : i32
    %c0_i32_1 = arith.constant 0 : i32
    return %arg0, %arg1, %c0_i32, %c0_i32_0 : i32, i32, i32, i32
  }
  func.func @transform_2(%arg0: i32, %arg1: i32) -> (i32, i32) {
    %c0_i32 = arith.constant 0 : i32
    %c0_i32_0 = arith.constant 0 : i32
    %c0_i32_1 = arith.constant 0 : i32
    return %c0_i32, %c0_i32_0 : i32, i32
  }
  func.func @transform_3(%arg0: i32, %arg1: i32) -> (i32, i32) {
    %c0_i32 = arith.constant 0 : i32
    %c0_i32_0 = arith.constant 0 : i32
    %c0_i32_1 = arith.constant 0 : i32
    return %c0_i32, %c0_i32_0 : i32, i32
  }
  func.func @transform_4(%arg0: i32, %arg1: i32) -> (i32, i32) {
    %c0_i32 = arith.constant 0 : i32
    %c0_i32_0 = arith.constant 0 : i32
    %c0_i32_1 = arith.constant 0 : i32
    return %c0_i32, %c0_i32_0 : i32, i32
  }
  func.func @transform_5(%arg0: i32, %arg1: i32) -> (i32, i32, i32) {
    %c0_i32 = arith.constant 0 : i32
    %c0_i32_0 = arith.constant 0 : i32
    return %arg0, %c0_i32, %arg1 : i32, i32, i32
  }
}

</mosaic_0001>

<bundles_post_ra>
// kernel: tpu_custom_call.1
= control target key start
LH: loop header
LB: loop body
LE: loop exit
PB: predicated region body
PF: predicated region fallthrough
CT: control target
= control target key end

     0   :  { %s1343_s0 = inlined_call_operand.hbm [shape: f32[2,4,256], index: 0, kind: input, shape index: {}]   ;;  %s1344_s1 = inlined_call_operand.hbm [shape: f32[2,2,4,32], index: 1, kind: input, shape index: {}]   ;;  %s1345_s2 = inlined_call_operand.vmem [shape: f32[3,128], index: 2, kind: input, shape index: {}]   ;;  %s1346_s3 = inlined_call_operand.vmem [shape: f32[8,36], index: 3, kind: input, shape index: {}]   ;;  %s1347_s4 = inlined_call_operand.vmem [shape: f32[8,1], index: 4, kind: input, shape index: {}]   ;;  %s1348_s5 = inlined_call_operand.hbm [shape: f32[2,8,256], index: 5, kind: output, shape index: {}]  }
   0x1   :  { %1355 = sst [smem:[#allocation15_spill]] %s1343_s0 }
   0x2   :  { %10 = vsyncpa [#allocation5], 0 }
   0x3   :  { %12 = vsyncpa [#allocation5 + $0x1], 0 }
   0x4   :  { %13 = vsyncpa [#allocation8], 0 }
   0x5   :  { %15 = vsyncpa [#allocation8 + $0x1], 0 }
   0x6   :  { %16 = vsyncpa [#allocation6], 0 }
   0x7   :  { %18 = vsyncpa [#allocation6 + $0x1], 0  ;;  %s1079_s18 = smov 0   ;;  %s1081_s19 = smov 0  }
   0x8   :  { %s1083_s20 = smov 0   ;;  %s1085_s21 = smov 0  }
   0x9   :  { %s1087_s22 = smov 0   ;;  %s1089_s23 = smov 0  }
   0xa   :  { %s1091_s24 = smov 0   ;;  %s1093_s25 = smov 0  }
   0xb LB: > { %s707_s26 = sadd.s32 4294967295, %s1025_s25   ;;  %s708_s27 = sadd.s32 4294967294, %s1025_s25   ;;  %s1025_s25 = sphi %s1093_s25, %s24_s25   ;;  %s1021_s24 = sphi %s1091_s24, %s1381_s24   ;;  %s1017_s23 = sphi %s1089_s23, %s1380_s23   ;;  %s1013_s22 = sphi %s1087_s22, %s1379_s22   ;;  %s1009_s21 = sphi %s1085_s21, %s1378_s21   ;;  %s1005_s20 = sphi %s1083_s20, %s1377_s20   ;;  %s1001_s19 = sphi %s1081_s19, %s1376_s19   ;;  %s997_s18 = sphi %s1079_s18, %s1375_s18  }
   0xc   : > { %s33_s28 = sadd.s32 1, %s1017_s23  ;;  %s36_s29 = sadd.s32 1, %s1021_s24 }
   0xd   : > { %p34_p0 = scmp.ge.s32.totalorder %s33_s28, 2  ;;  %s45_s30 = sadd.s32 1, %s1005_s20 }
   0xe   : > { %p52_p1 = scmp.ne.s32.totalorder %s1005_s20, %s1001_s19  ;;  %p53_p2 = scmp.eq.s32.totalorder %s1025_s25, 0 }
   0xf   : > { %s1383_s28 = smov (%p34_p0, %s33_s28), 0  ;;  %s1385_s29 = smov (!%p34_p0, %s36_s29), %s1021_s24 }
  0x10   : > { %1356 = sst [smem:[#allocation13_spill]] %s1383_s28  ;;  %s41_s6 = ssub.s32 %s1017_s23, %s1383_s28 }
  0x11   : > { %p1132_p3 = por %p53_p2, %p52_p1  ;;  %p38_p4 = scmp.ge.s32.totalorder %s1385_s29, 2 }
  0x12   : > { %p58_p5 = scmp.ne.s32.totalorder %s1001_s19, %s997_s18  ;;  %p59_p6 = scmp.eq.s32.totalorder %s707_s26, 0 }
  0x13   : > { %p175_p7 = scmp.eq.s32.totalorder %s707_s26, 3  ;;  %s1387_s29 = smov (%p38_p4, %s1385_s29), 0 }
  0x14   : > { %1358 = sst [smem:[#allocation14_spill]] %s1387_s29  ;;  %p1140_p8 = por %p59_p6, %p58_p5 }
  0x15   : > { %p1144_p9 = por %p175_p7, %p52_p1  ;;  %s40_s10 = ssub.s32 %s1021_s24, %s1387_s29 }
  0x16   : > { %s1359_s8 = scalar_select %p1140_p8, 1, 0 }
  0x17   : > { %s1360_s9 = scalar_select %p1144_p9, 1, 0 }
  0x18   : > { %p181_p10 = scmp.eq.s32.totalorder %s708_s27, 3  ;;  %s42_s11 = sor.u32 %s41_s6, %s40_s10 }
  0x19   : > { %p43_p11 = scmp.eq.s32.totalorder %s42_s11, 0  ;;  %p776_p13 = scmp.lt.s32.totalorder %s1025_s25, 4 }
  0x1a   : > { %p1150_p12 = por %p181_p10, %p58_p5  ;;  %s1156_s13 = sand.u32 1, %s1005_s20  }
  0x1b   : > { %s1159_s14 = scalar_select %p43_p11, %s1005_s20, %s45_s30  }
  0x1c   : > { %s1361_s12 = scalar_select %p1150_p12, 1, 0 }
  0x1d   : > { %s1350_s15 = sshll.u32 %s1156_s13, 2  ;;  %s712_s16 = sshll.u32 %s1021_s24, 1 }
  0x1e   : > { %s1164_s17 = sadd.s32 %s1017_s23, %s712_s16  ;;  %s214_s26 = scalar_lea.vmem [#allocation4], %s1350_s15 }
  0x1f   : > { %s223_s27 = sshll.u32 %s214_s26, 4  ;;  %s1351_s6 = sshll.u32 %s1164_s17, 6  ;;  %s1169_s27 = int_to_ptr.vmem [resolvable:$true] %s223_s27 }
  0x20   : > { %s1362_s0 = sld [smem:[#allocation15_spill]]  ;;  %p1180_p0 = pnand %p776_p13, %p1132_p3 }
  0x21   : > { %s211_s16 = scalar_lea.sflag [#allocation5], %s1156_s13 }
  0x22   : > { %p865_p5 = pneg %p1180_p0 }
  0x26   : > { %s1176_s29 = scalar_lea.hbm %s1362_s0, %s1351_s6  ;;  %s868_s11 = scalar_lea.hbm %s1362_s0, 256 }
  0x27   : > { %s863_s26 = scalar_lea.hbm %s1176_s29, 64  ;;  %p869_p3 = scmp.lt.u32.totalorder %s1176_s29, %s1362_s0 }
  0x28   : > { %p864_p4 = scmp.ne.s32.totalorder %s1176_s29, %s863_s26  ;;  %p870_p10 = scmp.lt.u32.totalorder %s868_s11, %s863_s26 }
  0x29   : > { %p872_p13 = scmp.lt.u32.totalorder %s863_s26, %s1176_s29 }
  0x2a   : > { %p866_p6 = pnand %p865_p5, %p864_p4  ;;  %p871_p11 = por %p870_p10, %p869_p3 }
  0x2c   : > { %p867_p7 = pneg %p866_p6  ;;  %p873_p1 = por %p872_p13, %p871_p11 }
  0x2e   : > { %p874_p2 = pnand %p873_p1, %p867_p7 }
  0x30   : > { %877 = shalt.err (!%p874_p2)
}
  0x31   : > { %s878_s28 = scalar_lea.vmem %s1169_s27, 64  ;;  %s1027_s7 = smov [#allocation4]  }
  0x32   : > { %p879_p4 = scmp.ne.s32.totalorder %s1169_s27, %s878_s28  ;;  %s883_s10 = sshll.u32 %s1027_s7, 4  ;;  %s884_s10 = int_to_ptr.vmem [resolvable:$false] %s883_s10 }
  0x33   : > { %s885_s15 = scalar_lea.vmem %s884_s10, 128  ;;  %p886_p9 = scmp.lt.s32.totalorder %s1169_s27, %s884_s10 }
  0x34   : > { %p881_p6 = pnand %p879_p4, %p865_p5  ;;  %p887_p3 = scmp.lt.s32.totalorder %s885_s15, %s878_s28 }
  0x36   : > { %p882_p12 = pneg %p881_p6  ;;  %p888_p10 = por %p887_p3, %p886_p9 }
  0x38   : > { %p889_p11 = pnand %p888_p10, %p882_p12 }
  0x3a   : > { %892 = shalt.err (!%p889_p11)
}
  0x3b   : > { %768 = dma.hbm_to_vmem [thread:$0]  (!%p1180_p0), %s1176_s29, 64, %s1169_s27, %s211_s16  }
  0x3c   : > { %p1364_p1 = scmp.lt.s32.totalorder %s1025_s25, 5  ;;  %p1365_p2 = scmp.ge.s32.totalorder %s1025_s25, 1 }
  0x3d   : > { %s1367_s28 = sshll.u32 %s1164_s17, 6  ;;  %s1368_s10 = sshll.u32 %s1156_s13, 2 }
  0x3e   : > { %p1216_p7 = pnand %p1365_p2, %p1364_p1  ;;  %s1225_s7 = scalar_lea.hbm %s1344_s1, %s1367_s28 }
  0x3f   : > { %s234_s15 = scalar_lea.vmem [#allocation7], %s1368_s10  ;;  %s231_s29 = scalar_lea.sflag [#allocation8], %s1156_s13 }
  0x40   : > { %s1366_s6 = scalar_select %p1216_p7, 1, 0 }
  0x41   : > { %s243_s0 = sshll.u32 %s234_s15, 4  ;;  %s893_s27 = scalar_lea.hbm %s1225_s7, 64  ;;  %s244_s0 = int_to_ptr.vmem [resolvable:$true] %s243_s0 }
  0x42   : > { %p894_p9 = scmp.ne.s32.totalorder %s1225_s7, %s893_s27  ;;  %s898_s28 = scalar_lea.hbm %s1344_s1, 256 }
  0x43   : > { %p899_p4 = scmp.lt.u32.totalorder %s1225_s7, %s1344_s1  ;;  %p900_p6 = scmp.lt.u32.totalorder %s898_s28, %s893_s27 }
  0x44   : > { %p896_p12 = pnand %p894_p9, %p865_p5  ;;  %p902_p10 = scmp.lt.u32.totalorder %s893_s27, %s1225_s7 }
  0x45   : > { %p901_p3 = por %p900_p6, %p899_p4 }
  0x46   : > { %p897_p13 = pneg %p896_p12 }
  0x47   : > { %p903_p11 = por %p902_p10, %p901_p3 }
  0x49   : > { %p904_p1 = pnand %p903_p11, %p897_p13 }
  0x4b   : > { %907 = shalt.err (!%p904_p1)
}
  0x4c   : > { %s908_s13 = scalar_lea.vmem %s244_s0, 64  ;;  %s1028_s10 = smov [#allocation7]  }
  0x4d   : > { %p909_p2 = scmp.ne.s32.totalorder %s244_s0, %s908_s13  ;;  %s913_s15 = sshll.u32 %s1028_s10, 4  ;;  %s914_s15 = int_to_ptr.vmem [resolvable:$false] %s913_s15 }
  0x4e   : > { %s915_s17 = scalar_lea.vmem %s914_s15, 128  ;;  %p916_p8 = scmp.lt.s32.totalorder %s244_s0, %s914_s15 }
  0x4f   : > { %p911_p9 = pnand %p909_p2, %p865_p5  ;;  %p917_p7 = scmp.lt.s32.totalorder %s915_s17, %s908_s13 }
  0x51   : > { %p912_p12 = pneg %p911_p9  ;;  %p918_p4 = por %p917_p7, %p916_p8 }
  0x53   : > { %p919_p6 = pnand %p918_p4, %p912_p12 }
  0x55   : > { %922 = shalt.err (!%p919_p6)
}
  0x56   : > { %771 = dma.hbm_to_vmem [thread:$0]  (!%p1180_p0), %s1225_s7, 64, %s244_s0, %s231_s29  }
  0x57   : > { %p1369_p13 = scmp.ne.s32.totalorder %s1366_s6, 0 }
  0x58   : > { %s1252_s27 = sand.u32 (!%p1369_p13), 1, %s1001_s19   ;;  %p1370_p5 = scmp.ne.s32.totalorder (!%p1369_p13), %s1359_s8, 0 }
  0x59   : > { %252 = sbr.rel (%p1369_p13) target bundleno = 616 (0x268), region = 40  ;;  %s718_s16 = sshll.u32 (!%p1369_p13), %s1252_s27, 2 }
  0x5a   : > { %s255_s28 = scalar_lea.sflag (!%p1369_p13), [#allocation5], %s1252_s27  ;;  %s258_s26 = scalar_lea.vmem (!%p1369_p13), [#allocation4], %s718_s16 }
  0x60   : > { %984 = dma.done.wait (%p1370_p5), %s255_s28, 64  }
  0x61   : > { %986 = vsyncadd (%p1370_p5), %s255_s28, 4294967232  ;;  %s264_s0 = scalar_lea.sflag [#allocation8], %s1252_s27  ;;  %s267_s30 = scalar_lea.vmem [#allocation7], %s718_s16 }
  0x62   : > { %988 = dma.done.wait (%p1370_p5), %s264_s0, 64  }
  0x63   : > { %990 = vsyncadd (%p1370_p5), %s264_s0, 4294967232  ;;  %vm299_vm0 = vcmask 3072   ;;  %v1029_v0 = vmov 0.0   ;;  %v320_v1 = vld [vmem:[%s267_s30] sm:$0xf]  ;;  %s1030_s6 = smov 1  }
  0x64   : > { %300 = vst.msk [vmem:[#allocation2] sm:$0xf] %vm299_vm0, %v1029_v0  ;;  %v308_v2 = vld [vmem:[%s258_s26] sm:$0xf]  ;;  %322 = vrot.lane.b32.xlu1 %v320_v1, %s1030_s6  ;;  %s1031_s7 = smov 17   ;;  %s1032_s13 = smov 2  }
  0x65   : > { %310 = vrot.lane.b32.xlu0 %v308_v2, %s1031_s7  ;;  %v722_v3 = vld [vmem:[%s1345_s2 + $0x2] ss:$0 sm:$0xff]  ;;  %v301_v4 = vld [vmem:[%s267_s30] sm:$0xf]  ;;  %v723_v5 = vld [vmem:[%s1345_s2] ss:$0 sm:$0xff] }
  0x66   : > { %s1033_s15 = smov 18   ;;  %s1034_s17 = smov 16   ;;  %vm316_vm1 = vcmask 1043592   ;;  %vm317_vm2 = vcmask 138244   ;;  %vm313_vm3 = vcmask 138240   ;;  %vm306_vm4 = vcmask 134152  }
  0x67   : > { %s1035_s16 = smov 34   ;;  %s1036_s28 = smov 32   ;;  %vm318_vm5 = vmor %vm317_vm2, %vm316_vm1  ;;  %vm325_vm6 = vcmask 265352   ;;  %vm327_vm7 = vcmask 273672   ;;  %vm358_vm8 = vcmask 15360   ;;  %vm382_vm9 = vcmask 130048  }
  0x68   : > { %355 = vrot.lane.b32.xlu1 %v722_v3, %s1032_s13  ;;  %s1037_s26 = smov 127   ;;  %s1038_s0 = smov 111   ;;  %vm417_vm10 = vcmask 146432   ;;  %vm441_vm11 = vcmask 261120   ;;  %v1041_v29 = vmov 0.0|0.0   ;;  %vm476_vm12 = vcmask 277504  }
  0x69   : > { %303 = vrot.lane.b32.xlu0 %v301_v4, %s1030_s6  ;;  %s1039_s30 = smov 126   ;;  %s1040_s6 = smov 112   ;;  %753 = vmatprep.subr.bf16.mxu0 %v1041_v29  ;;  %vm1046_vm13 = vmmov 0   ;;  %v496_v41 = vld [vmem:[%s1347_s4] sm:$0xff]  ;;  %v1047_v42 = vmov 0   ;;  %vm344_vm14 = vcmask 1039360  }
  0x6a   : > { %s1042_s7 = smov 110   ;;  %s1043_s29 = smov 96   ;;  %750 = vmatprep.mubr.msk.f32.mxu0 %vm1046_vm13, %v1029_v0  ;;  %861 = vset.pattern.permute.xlu0 %v1047_v42  ;;  %vm403_vm15 = vcmask 908288   ;;  %vm368_vm0 = vcmask 1031168   ;;  %vm392_vm1 = vcmask 916480   ;;  %vm427_vm2 = vcmask 900096  }
  0x6b   : > { %s1044_s11 = smov 95   ;;  %s1045_s13 = smov 94  }
  0x6c   : > { %414 = vrot.lane.b32.xlu1 %v722_v3, %s1033_s15  ;;  %p1371_p0 = scmp.ne.s32.totalorder %s1360_s9, 0 }
  0x6d   : > { %379 = vrot.lane.b32.xlu0 %v723_v5, %s1034_s17 }
  0x70   : > { %473 = vrot.lane.b32.xlu1 %v722_v3, %s1035_s16  ;;  %s720_s16 = sshll.u32 %s1252_s27, 3 }
  0x71   : > { %438 = vrot.lane.b32.xlu0 %v723_v5, %s1036_s28  ;;  %s730_s28 = sshll.u32 %s1013_s22, 1  ;;  %s582_s22 = scalar_lea.sflag [#allocation6], %s1252_s27 }
  0xd6   : > { %v323_v10 = vpop.permute.xlu1 %322 }
  0xd7   : > { %v311_v6 = vpop.permute.xlu0 %310 }
  0xd8   : > { %v312_v7 = vrot.slane %v311_v6, 4 }
  0xda   : > { %v314_v9 = vsel %vm313_vm3, %v312_v7, %v311_v6  ;;  %v356_v11 = vpop.permute.xlu1 %355  ;;  %vm451_vm3 = vcmask 785408  }
  0xdb   : > { %v304_v8 = vpop.permute.xlu0 %303  ;;  %v357_v13 = vrot.slane %v356_v11, 4 }
  0xdc   : > { %307 = vst.msk [vmem:[#allocation2] sm:$0xf] %vm306_vm4, %v304_v8  ;;  %vm462_vm4 = vcmask 777216  }
  0xdd   : > { %319 = vst.msk [vmem:[#allocation2] sm:$0xff] %vm318_vm5, %v314_v9  ;;  %v359_v18 = vsel %vm358_vm8, %v357_v13, %v356_v11  ;;  %vm486_vm5 = vcmask 769024  }
  0xde   : > { %326 = vst.msk [vmem:[#allocation2 + $0x4] sm:$0xf] %vm325_vm6, %v323_v10  ;;  %v415_v20 = vpop.permute.xlu1 %414  ;;  %vm506_vm6 = vcmask 1043456   ;;  %v490_v10 = vld [vmem:[%s1346_s3] sm:$0xff] }
  0xdf   : > { %328 = vst.msk [vmem:[#allocation2 + $0x4] sm:$0xf] %vm327_vm7, %v1029_v0  ;;  %v380_v16 = vpop.permute.xlu0 %379  ;;  %v416_v22 = vrot.slane %v415_v20, 4  ;;  %vm502_vm7 = vcmask 293888  }
  0xe0   : > { %v381_v19 = vrot.slane %v380_v16, 4 }
  0xe1   : > { %v418_v27 = vsel %vm417_vm10, %v416_v22, %v415_v20 }
  0xe2   : > { %v383_v23 = vsel %vm382_vm9, %v381_v19, %v380_v16  ;;  %v474_v33 = vpop.permute.xlu1 %473 }
  0xe3   : > { %v439_v24 = vpop.permute.xlu0 %438  ;;  %v475_v36 = vrot.slane %v474_v33, 4 }
  0xe4   : > { %v329_v12 = vld [vmem:[#allocation2] sm:$0xf]  ;;  %v440_v28 = vrot.slane %v439_v24, 4 }
  0xe5   : > { %v335_v14 = vmul.f32 %v723_v5, %v329_v12  ;;  %v477_v38 = vsel %vm476_vm12, %v475_v36, %v474_v33 }
  0xe6   : > { %v407_v15 = vld [vmem:[#allocation2] sm:$0xff]  ;;  %v442_v32 = vsel %vm441_vm11, %v440_v28, %v439_v24 }
  0xe7   : > { %340 = vrot.lane.b32.xlu0 %v407_v15, %s1037_s26  ;;  %336 = vst [vmem:[#allocation3] sm:$0xf] %v335_v14  ;;  %v339_v17 = vcombine.high %v407_v15, %v407_v15  ;;  %v361_v21 = vmul.f32 %v407_v15, %v359_v18  ;;  %v385_v25 = vmul.f32 %v407_v15, %v383_v23 }
  0xe8   : > { %v420_v30 = vmul.f32 %v418_v27, %v407_v15  ;;  %v444_v34 = vmul.f32 %v442_v32, %v407_v15  ;;  %v479_v39 = vmul.f32 %v477_v38, %v407_v15 }
  0xe9   : > { %342 = vrot.lane.b32.xlu1 %v339_v17, %s1037_s26  ;;  %v363_v26 = vcombine.high %v361_v21, %v361_v21  ;;  %v387_v31 = vcombine.high %v385_v25, %v385_v25  ;;  %s593_s26 = sadd.s32 %s1009_s21, %s730_s28 }
  0xea   : > { %v422_v35 = vcombine.high %v420_v30, %v420_v30  ;;  %v446_v37 = vcombine.high %v444_v34, %v444_v34  ;;  %v481_v40 = vcombine.high %v479_v39, %v479_v39 }
  0xeb   : > { %399 = vrot.lane.b32.xlu0 %v407_v15, %s1038_s0 }
  0xed   : > { %401 = vrot.lane.b32.xlu1 %v339_v17, %s1038_s0  ;;  %s731_s0 = sshll.u32 %s593_s26, 7 }
  0xef   : > { %364 = vrot.lane.b32.xlu0 %v361_v21, %s1039_s30 }
  0xf1   : > { %366 = vrot.lane.b32.xlu1 %v363_v26, %s1039_s30  ;;  %s298_s30 = scalar_lea.vmem [#allocation9], %s720_s16 }
  0xf3   : > { %388 = vrot.lane.b32.xlu0 %v385_v25, %s1040_s6 }
  0xf5   : > { %390 = vrot.lane.b32.xlu1 %v387_v31, %s1040_s6  ;;  %s597_s6 = sshll.u32 %s298_s30, 4  ;;  %s1291_s6 = int_to_ptr.vmem [resolvable:$true] %s597_s6 }
  0xf6   : > { %s923_s21 = scalar_lea.vmem %s1291_s6, 128 }
  0xf7   : > { %423 = vrot.lane.b32.xlu0 %v420_v30, %s1042_s7  ;;  %p924_p8 = scmp.ne.s32.totalorder %s1291_s6, %s923_s21 }
  0xf9   : > { %425 = vrot.lane.b32.xlu1 %v422_v35, %s1042_s7  ;;  %p925_p7 = pnand %p924_p8, %p1371_p0 }
  0xfb   : > { %447 = vrot.lane.b32.xlu0 %v444_v34, %s1043_s29  ;;  %p926_p3 = pneg %p925_p7 }
  0xfd   : > { %449 = vrot.lane.b32.xlu1 %v446_v37, %s1043_s29 }
  0xff   : > { %458 = vrot.lane.b32.xlu0 %v407_v15, %s1044_s11 }
 0x101   : > { %460 = vrot.lane.b32.xlu1 %v339_v17, %s1044_s11  ;;  %s1289_s11 = scalar_lea.hbm %s1348_s5, %s731_s0 }
 0x103   : > { %482 = vrot.lane.b32.xlu0 %v479_v39, %s1045_s13 }
 0x105   : > { %484 = vrot.lane.b32.xlu1 %v481_v40, %s1045_s13  ;;  %s1048_s13 = smov [#allocation9]  }
 0x106   : > { %s927_s8 = sshll.u32 %s1048_s13, 4  ;;  %s928_s8 = int_to_ptr.vmem [resolvable:$false] %s927_s8 }
 0x107   : > { %499 = vperm.xlu0 %861, %v496_v41   ;;  %s929_s10 = scalar_lea.vmem %s928_s8, 256  ;;  %p930_p10 = scmp.lt.s32.totalorder %s1291_s6, %s928_s8 }
 0x108   : > { %p931_p11 = scmp.lt.s32.totalorder %s929_s10, %s923_s21 }
 0x10a   : > { %p932_p1 = por %p931_p11, %p930_p10 }
 0x10c   : > { %p933_p2 = pnand %p932_p1, %p926_p3 }
 0x159   : > { %v341_v43 = vpop.permute.xlu0 %340 }
 0x15b   : > { %v343_v44 = vpop.permute.xlu1 %342 }
 0x15c   : > { %v345_v45 = vsel %vm344_vm14, %v341_v43, %v343_v44 }
 0x15d   : > { %v400_v46 = vpop.permute.xlu0 %399  ;;  %347 = vst [vmem:[#allocation3 + $0x4] sm:$0xf] %v345_v45 }
 0x15f   : > { %v402_v47 = vpop.permute.xlu1 %401 }
 0x160   : > { %v404_v48 = vsel %vm403_vm15, %v400_v46, %v402_v47 }
 0x161   : > { %v365_v49 = vpop.permute.xlu0 %364  ;;  %406 = vst [vmem:[#allocation3 + $0x10] sm:$0xf] %v404_v48 }
 0x163   : > { %v367_v50 = vpop.permute.xlu1 %366 }
 0x164   : > { %v369_v51 = vsel %vm368_vm0, %v365_v49, %v367_v50  ;;  %v491_v61 = vld [vmem:[#allocation3] sm:$0xff] }
 0x165   : > { %v389_v52 = vpop.permute.xlu0 %388  ;;  %371 = vst [vmem:[#allocation3 + $0x8] sm:$0xf] %v369_v51 }
 0x167   : > { %v391_v53 = vpop.permute.xlu1 %390 }
 0x168   : > { %v393_v54 = vsel %vm392_vm1, %v389_v52, %v391_v53 }
 0x169   : > { %v424_v55 = vpop.permute.xlu0 %423  ;;  %395 = vst [vmem:[#allocation3 + $0xc] sm:$0xf] %v393_v54 }
 0x16b   : > { %v426_v56 = vpop.permute.xlu1 %425 }
 0x16c   : > { %v428_v57 = vsel %vm427_vm2, %v424_v55, %v426_v56 }
 0x16d   : > { %v448_v58 = vpop.permute.xlu0 %447  ;;  %430 = vst [vmem:[#allocation3 + $0x14] sm:$0xf] %v428_v57 }
 0x16f   : > { %v450_v59 = vpop.permute.xlu1 %449 }
 0x170   : > { %v452_v60 = vsel %vm451_vm3, %v448_v58, %v450_v59  ;;  %v492_v62 = vld [vmem:[#allocation3 + $0x8] sm:$0xff] }
 0x171   : > { %454 = vst [vmem:[#allocation3 + $0x18] sm:$0xf] %v452_v60  ;;  %v459_v63 = vpop.permute.xlu0 %458  ;;  %v754_v1 = vpack.c.bf16 %v492_v62, %v491_v61 }
 0x173   : > { %755 = vmatpush3.bf16.msra.mxu0 %v754_v1  ;;  %v461_v2 = vpop.permute.xlu1 %460 }
 0x174   : > { %v463_v3 = vsel %vm462_vm4, %v459_v63, %v461_v2  ;;  %756 = vmatprep.subr.bf16.mxu0 %v1041_v29  ;;  %v493_v7 = vld [vmem:[#allocation3 + $0x10] sm:$0xff] }
 0x175   : > { %465 = vst [vmem:[#allocation3 + $0x1c] sm:$0xf] %v463_v3  ;;  %v483_v4 = vpop.permute.xlu0 %482 }
 0x177   : > { %v485_v5 = vpop.permute.xlu1 %484 }
 0x178   : > { %v487_v6 = vsel %vm486_vm5, %v483_v4, %v485_v5 }
 0x179   : > { %489 = vst [vmem:[#allocation3 + $0x20] sm:$0xf] %v487_v6 }
 0x17c   : > { %v494_v8 = vld [vmem:[#allocation3 + $0x18] sm:$0xff] }
 0x17d   : > { %v757_v9 = vpack.c.bf16 %v494_v8, %v493_v7 }
 0x17f   : > { %758 = vmatpush3.bf16.msra.mxu0 %v757_v9 }
 0x180   : > { %748 = vmatprep.subr.mxu0 %v1029_v0  ;;  %v495_v11 = vld [vmem:[#allocation3 + $0x20] sm:$0xf] }
 0x183   : > { %749 = vmatpush3.msk.msra.mxu0 %vm506_vm6, %v495_v11 }
 0x184   : > { %751 = vmatmul.mubr.msk.f32.vlgmr.msra.gmra.mrb[0].mxu0 %vm502_vm7, %v490_v10 }
 0x186   : > { %v500_v12 = vpop.permute.xlu0 %499 }
 0x257   : > { %v576_v13 = vpop.f32.mrb[0].mxu0 }
 0x258   : > { %v577_v0 = vadd.f32 %v576_v13, %v500_v12  ;;  %v752_v14 = vpop.f32.mrb[1].mxu0 }
 0x25a   : > { %580 = vst [vmem:[%s298_s30] sm:$0xff] %v577_v0 }
 0x25b   : > { %936 = shalt.err (!%p933_p2)
}
 0x25c   : > { %s937_s27 = scalar_lea.hbm %s1289_s11, 128  ;;  %s941_s16 = scalar_lea.hbm %s1348_s5, 512 }
 0x25d   : > { %p938_p9 = scmp.ne.s32.totalorder %s1289_s11, %s937_s27  ;;  %p942_p6 = scmp.lt.u32.totalorder %s1289_s11, %s1348_s5 }
 0x25e   : > { %p943_p13 = scmp.lt.u32.totalorder %s941_s16, %s937_s27  ;;  %p945_p8 = scmp.lt.u32.totalorder %s937_s27, %s1289_s11 }
 0x25f   : > { %p939_p12 = pnand %p938_p9, %p1371_p0 }
 0x260   : > { %p944_p5 = por %p943_p13, %p942_p6 }
 0x261   : > { %p940_p4 = pneg %p939_p12 }
 0x262   : > { %p946_p7 = por %p945_p8, %p944_p5 }
 0x264   : > { %p947_p3 = pnand %p946_p7, %p940_p4 }
 0x266   : > { %950 = shalt.err (!%p947_p3)
}
 0x267   : > { %763 = dma.vmem_to_hbm [thread:$0]  (%p1371_p0), %s1291_s6, 128, %s1289_s11, %s582_s22  }
 0x268 PF: > { %p777_p10 = scmp.ge.s32.totalorder %s1025_s25, 2  ;;  %s609_s0 = sand.u32 1, %s997_s18  }
 0x269   : > { %p1372_p11 = scmp.ne.s32.totalorder %s1361_s12, 0  ;;  %s610_s30 = scalar_lea.sflag [#allocation6], %s609_s0 }
 0x26b   : > { %p773_p1 = pnand %p777_p10, %p1372_p11 }
 0x26d   : > { %992 = dma.done.wait (!%p773_p1), %s610_s30, 128  }
 0x26e   : > { %994 = vsyncadd (!%p773_p1), %s610_s30, 4294967168  ;;  %s24_s25 = sadd.s32 1, %s1025_s25   ;;  %s1373_s9 = sld [smem:[#allocation13_spill]] }
 0x26f   : > { %p21_p2 = scmp.ge.s32.totalorder %s24_s25, 6   ;;  %s1374_s6 = sld [smem:[#allocation14_spill]] }
 0x270   : > { %s1375_s18 = smov %s1001_s19  ;;  %s1376_s19 = smov %s1005_s20 }
 0x271   : > { %s1377_s20 = smov %s1159_s14  ;;  %s1378_s21 = smov %s1017_s23 }
 0x272   : > { %s1379_s22 = smov %s1021_s24  ;;  %23 = sbr.rel (!%p21_p2) target bundleno = 11 (0xb), region = 98 }
 0x274   : > { %s1380_s23 = smov %s1373_s9 }
 0x275   : > { %s1381_s24 = smov %s1374_s6 }
 0x279   :  { %615 = vsyncpa [#allocation5], 1 }
 0x27a   :  { %617 = vsyncpa [#allocation5 + $0x1], 1 }
 0x27b   :  { %618 = vsyncpa [#allocation8], 1 }
 0x27c   :  { %620 = vsyncpa [#allocation8 + $0x1], 1 }
 0x27d   :  { %621 = vsyncpa [#allocation6], 1 }
 0x27e   :  { %623 = vsyncpa [#allocation6 + $0x1], 1 }

</bundles_post_ra>
